<compile_context>
chip_gen: v7x
topology: tpu7x:2x2x1
jax: 0.10.0
libtpu: 0.0.40
codegen_flags: <defaults>
</compile_context>

<pallas_src>
import jax
import jax.numpy as jnp
from jax.experimental import pallas as pl
from jax.experimental.pallas import tpu as pltpu

IN_FEATURES = 2916          # QMUL variant of Regressor
OUT_FEATURES = 1


def _round_up(n, m):
    return ((n + m - 1) // m) * m


def _pick_config(B):
    """Choose (tile_b, vmem_limit_bytes) per TPU generation."""
    try:
        kind = jax.devices()[0].device_kind.lower()
    except Exception:
        kind = ""
    large_vmem = ("v5" in kind) or ("v6" in kind)      # 128 MiB physical VMEM
    if large_vmem:
        # Single TensorCore, slower HBM: big tiles amortize per-step overhead.
        tile_b = min(2048, _round_up(B, 8))
        vmem_limit = 64 * 1024 * 1024
    else:
        # v7x (64 MiB VMEM, 2 TCs) and unknown chips: conservative VMEM, and
        # cap at ~half the batch so grid >= 2 and both TensorCores get work.
        tile_b = min(1024, _round_up(pl.cdiv(B, 2), 8), _round_up(B, 8))
        vmem_limit = 32 * 1024 * 1024
    return max(8, tile_b), vmem_limit


def _linear_kernel(x_ref, w_ref, o_ref):
    # x_ref: [TILE_B, 2916]  (VMEM, streamed)
    # w_ref: [1, 2916]       (VMEM, same block every grid step -> resident)
    # o_ref: [TILE_B, 1]     (VMEM)
    x = x_ref[...].astype(jnp.float32)
    w = w_ref[...].astype(jnp.float32)
    # VPU multiply + XLU lane reduction (no MXU for an N=1 output; the compute
    # is fully hidden under the HBM stream).
    acc = jnp.sum(x * w, axis=-1, keepdims=True)       # f32 [TILE_B, 1]
    o_ref[...] = acc.astype(o_ref.dtype)


def regressor_forward(x, weight, bias, tile_b=None):
    """Pallas equivalent of Regressor.forward (QMUL: Linear(2916, 1)).

    Args:
      x:      [B, 2916]
      weight: [1, 2916]  (PyTorch nn.Linear layout: [out, in])
      bias:   [1]
      tile_b: optional batch tile override (rows per grid step)

    Returns:
      [B, 1], dtype of x
    """
    B, F_in = x.shape
    assert F_in == IN_FEATURES, f"expected {IN_FEATURES} input features, got {F_in}"

    auto_tile, vmem_limit = _pick_config(B)
    if tile_b is None:
        tile_b = auto_tile
    tile_b = max(8, min(_round_up(tile_b, 8), _round_up(B, 8)))

    grid = (pl.cdiv(B, tile_b),)

    itemsize = jnp.dtype(x.dtype).itemsize
    cost = pl.CostEstimate(
        flops=2 * B * IN_FEATURES,
        transcendentals=0,
        bytes_accessed=(B * IN_FEATURES * itemsize
                        + IN_FEATURES * jnp.dtype(weight.dtype).itemsize
                        + B * OUT_FEATURES * itemsize),
    )

    out = pl.pallas_call(
        _linear_kernel,
        out_shape=jax.ShapeDtypeStruct((B, OUT_FEATURES), x.dtype),
        grid=grid,
        in_specs=[
            # x: full feature dim per block (legal: last dim == full array dim),
            # batch tiles streamed / double-buffered.
            pl.BlockSpec((tile_b, IN_FEATURES), lambda i: (i, 0)),
            # weight row: same block every step -> stays resident in VMEM.
            pl.BlockSpec((1, IN_FEATURES), lambda i: (0, 0)),
        ],
        out_specs=pl.BlockSpec((tile_b, OUT_FEATURES), lambda i: (i, 0)),
        compiler_params=pltpu.CompilerParams(
            dimension_semantics=("parallel",),   # batch tiles independent
            vmem_limit_bytes=vmem_limit,
        ),
        cost_estimate=cost,
    )(x, weight)

    # Scalar bias add in the wrapper (no per-step (1,1) bias DMA).
    return out + bias.reshape(1, OUT_FEATURES)


def _reference_forward(x, weight, bias):
    # Pure-JAX reference matching torch.nn.Linear semantics: x @ W^T + b
    return x @ weight.T + bias


if __name__ == "__main__":
    key = jax.random.PRNGKey(0)
    k_x, k_w, k_b, k_x2 = jax.random.split(key, 4)

    # Deterministic init mimicking nn.Linear's uniform(-1/sqrt(in), 1/sqrt(in)).
    bound = 1.0 / jnp.sqrt(jnp.float32(IN_FEATURES))
    weight = jax.random.uniform(
        k_w, (OUT_FEATURES, IN_FEATURES), jnp.float32, minval=-bound, maxval=bound
    )
    bias = jax.random.uniform(
        k_b, (OUT_FEATURES,), jnp.float32, minval=-bound, maxval=bound
    )

    # Primary small test (single tile).
    B = 8
    x = jax.random.normal(k_x, (B, IN_FEATURES), jnp.float32)
    out = jax.block_until_ready(regressor_forward(x, weight, bias))
    ref = _reference_forward(x, weight, bias)
    assert out.shape == (B, OUT_FEATURES)
    assert jnp.allclose(out, ref, atol=1e-4, rtol=1e-4), "mismatch vs reference (B=8)"

    # Secondary test: multi-tile cdiv grid with a ragged final tile (300 % 128 != 0).
    B2 = 300
    x2 = jax.random.normal(k_x2, (B2, IN_FEATURES), jnp.float32)
    out2 = jax.block_until_ready(regressor_forward(x2, weight, bias, tile_b=128))
    ref2 = _reference_forward(x2, weight, bias)
    assert out2.shape == (B2, OUT_FEATURES)
    assert jnp.allclose(out2, ref2, atol=1e-4, rtol=1e-4), "mismatch vs reference (B=300)"

    print("KERNEL_OK")
</pallas_src>

<mosaic_0001>
module attributes {stable_mosaic.version = 11 : i64} {
  func.func @_linear_kernel(%arg0: i32, %arg1: memref<8x2916xf32, #tpu.memory_space<vmem>>, %arg2: memref<1x2916xf32, #tpu.memory_space<vmem>>, %arg3: memref<8x1xf32, #tpu.memory_space<vmem>>) attributes {dimension_semantics = [#tpu.dimension_semantics<parallel>], iteration_bounds = array<i64: 1>, scalar_prefetch = 0 : i64, scratch_operands = 0 : i64, tpu.core_type = #tpu.core_type<tc>, window_params = [{transform_indices = @transform_0, window_bounds = array<i64: 8, 2916>}, {pipeline_mode = #tpu.pipeline_mode<synchronous>, transform_indices = @transform_1, window_bounds = array<i64: 1, 2916>}, {transform_indices = @transform_2, window_bounds = array<i64: 8, 1>}]} {
    %c0 = arith.constant 0 : index
    %c0_0 = arith.constant 0 : index
    %0 = vector.load %arg1[%c0, %c0_0] : memref<8x2916xf32, #tpu.memory_space<vmem>>, vector<8x2916xf32>
    %c0_1 = arith.constant 0 : index
    %c0_2 = arith.constant 0 : index
    %1 = vector.load %arg2[%c0_1, %c0_2] : memref<1x2916xf32, #tpu.memory_space<vmem>>, vector<1x2916xf32>
    %2 = vector.broadcast %1 : vector<1x2916xf32> to vector<8x2916xf32>
    %3 = arith.mulf %0, %2 : vector<8x2916xf32>
    %cst = arith.constant dense<0.000000e+00> : vector<8xf32>
    %4 = vector.multi_reduction <add>, %3, %cst [1] : vector<8x2916xf32> to vector<8xf32>
    %5 = vector.shape_cast %4 : vector<8xf32> to vector<8x1xf32>
    %c0_3 = arith.constant 0 : index
    %c0_4 = arith.constant 0 : index
    %6 = vector.load %arg3[%c0_3, %c0_4] : memref<8x1xf32, #tpu.memory_space<vmem>>, vector<8x1xf32>
    tpu.vector_store %arg3[%c0_3, %c0_4], %5 {strides = array<i32>} : memref<8x1xf32, #tpu.memory_space<vmem>>, vector<8x1xf32>,
    return
  }
  func.func @transform_0(%arg0: i32) -> (i32, i32) {
    %c0_i32 = arith.constant 0 : i32
    %c0_i32_0 = arith.constant 0 : i32
    return %arg0, %c0_i32 : i32, i32
  }
  func.func @transform_1(%arg0: i32) -> (i32, i32) {
    %c0_i32 = arith.constant 0 : i32
    %c0_i32_0 = arith.constant 0 : i32
    %c0_i32_1 = arith.constant 0 : i32
    return %c0_i32, %c0_i32_0 : i32, i32
  }
  func.func @transform_2(%arg0: i32) -> (i32, i32) {
    %c0_i32 = arith.constant 0 : i32
    %c0_i32_0 = arith.constant 0 : i32
    return %arg0, %c0_i32 : i32, i32
  }
}

</mosaic_0001>

<bundles_post_ra>
// kernel: tpu_custom_call.1
= control target key start
LH: loop header
LB: loop body
LE: loop exit
PB: predicated region body
PF: predicated region fallthrough
CT: control target
= control target key end

     0   :  { %7 = vsyncpa [#allocation3], 0  ;;  %s375_s0 = inlined_call_operand.hbm [shape: f32[8,2916], index: 0, kind: input, shape index: {}]   ;;  %s376_s1 = inlined_call_operand.hbm [shape: f32[1,2916], index: 1, kind: input, shape index: {}]   ;;  %s377_s2 = inlined_call_operand.vmem [shape: f32[8,1], index: 2, kind: output, shape index: {}]  }
   0x1   :  { %8 = vsyncpa [#allocation5], 0  ;;  %s286_s9 = smov [#allocation2]   ;;  %s287_s11 = smov [#allocation4]  }
   0x2   :  { %s15_s10 = sshll.u32 %s286_s9, 4  ;;  %s25_s12 = sshll.u32 %s287_s11, 4  ;;  %s16_s10 = int_to_ptr.vmem [resolvable:$true] %s15_s10  ;;  %s26_s12 = int_to_ptr.vmem [resolvable:$true] %s25_s12 }
   0x3   :  { %s238_s15 = scalar_lea.hbm %s375_s0, 2944 }
   0x4   :  { %p239_p0 = scmp.ne.s32.totalorder %s375_s0, %s238_s15  ;;  %p242_p1 = scmp.lt.u32.totalorder %s238_s15, %s375_s0 }
   0x6   :  { %p244_p2 = pnand %p242_p1, %p239_p0 }
   0x8   :  { %247 = shalt.err (!%p244_p2)
}
   0x9   :  { %s248_s20 = scalar_lea.vmem %s16_s10, 2944  ;;  %p253_p4 = scmp.lt.s32.totalorder %s16_s10, %s16_s10 }
   0xa   :  { %p249_p3 = scmp.ne.s32.totalorder %s16_s10, %s248_s20  ;;  %p254_p5 = scmp.lt.s32.totalorder %s248_s20, %s248_s20 }
   0xc   :  { %p255_p6 = por %p254_p5, %p253_p4 }
   0xe   :  { %p256_p7 = pnand %p255_p6, %p249_p3 }
  0x10   :  { %259 = shalt.err (!%p256_p7)
}
  0x11   :  { %18 = dma.hbm_to_vmem [thread:$0]  %s375_s0, 2944, %s16_s10, [#allocation3]  }
  0x12   :  { %s260_s25 = scalar_lea.hbm %s376_s1, 368 }
  0x13   :  { %p261_p8 = scmp.ne.s32.totalorder %s376_s1, %s260_s25  ;;  %p264_p9 = scmp.lt.u32.totalorder %s260_s25, %s376_s1 }
  0x15   :  { %p266_p10 = pnand %p264_p9, %p261_p8 }
  0x17   :  { %269 = shalt.err (!%p266_p10)
}
  0x18   :  { %s270_s30 = scalar_lea.vmem %s26_s12, 368  ;;  %s274_s3 = scalar_lea.vmem %s26_s12, 384 }
  0x19   :  { %p271_p11 = scmp.ne.s32.totalorder %s26_s12, %s270_s30  ;;  %p275_p12 = scmp.lt.s32.totalorder %s26_s12, %s26_s12 }
  0x1a   :  { %p276_p13 = scmp.lt.s32.totalorder %s274_s3, %s270_s30 }
  0x1c   :  { %p277_p0 = por %p276_p13, %p275_p12 }
  0x1e   :  { %p278_p1 = pnand %p277_p0, %p271_p11 }
  0x20   :  { %281 = shalt.err (!%p278_p1)
}
  0x21   :  { %28 = dma.hbm_to_vmem [thread:$0]  %s376_s1, 368, %s26_s12, [#allocation5]  }
  0x22   :  { %282 = dma.done.wait [#allocation3], 2944  }
  0x23   :  { %283 = vsyncadd [#allocation3], 4294964352 }
  0x24   :  { %284 = dma.done.wait [#allocation5], 368  }
  0x25   :  { %285 = vsyncadd [#allocation5], 4294966928  ;;  %v64_v0 = vlaneseq  ;;  %v58_v4 = vld [vmem:[#allocation4] sm:$0xff]  ;;  %v35_v9 = vld [vmem:[#allocation2] sm:$0xff]  ;;  %vm223_vm0 = vcmask 818176   ;;  %vm228_vm1 = vcmask 7168  }
  0x26   :  { %v36_v10 = vld [vmem:[#allocation2 + $0x8] sm:$0xff]  ;;  %v37_v13 = vld [vmem:[#allocation2 + $0x10] sm:$0xff]  ;;  %v38_v18 = vld [vmem:[#allocation2 + $0x18] sm:$0xff] }
  0x27   :  { %v327_v1 = vshrl.u32 %v64_v0, 7  ;;  %v39_v22 = vld [vmem:[#allocation2 + $0x20] sm:$0xff]  ;;  %v40_v27 = vld [vmem:[#allocation2 + $0x28] sm:$0xff]  ;;  %v41_v31 = vld [vmem:[#allocation2 + $0x30] sm:$0xff] }
  0x28   :  { %v59_v32 = vld [vmem:[#allocation4 + $0x8] sm:$0xff]  ;;  %v42_v36 = vld [vmem:[#allocation2 + $0x38] sm:$0xff]  ;;  %v44_v44 = vld [vmem:[#allocation2 + $0x48] sm:$0xff] }
  0x29   :  { %v330_v2 = vsub.s32 0, %v327_v1  ;;  %v333_v3 = vsub.s32 1, %v327_v1  ;;  %v336_v5 = vsub.s32 2, %v327_v1  ;;  %v341_v8 = vsub.s32 3, %v327_v1  ;;  %v43_v40 = vld [vmem:[#allocation2 + $0x40] sm:$0xff]  ;;  %v45_v48 = vld [vmem:[#allocation2 + $0x50] sm:$0xff] }
  0x2a   :  { %v345_v12 = vsub.s32 4, %v327_v1  ;;  %v349_v15 = vsub.s32 5, %v327_v1  ;;  %v353_v20 = vsub.s32 6, %v327_v1  ;;  %v94_v24 = vsub.s32 7, %v327_v1  ;;  %v46_v52 = vld [vmem:[#allocation2 + $0x58] sm:$0xff]  ;;  %v47_v56 = vld [vmem:[#allocation2 + $0x60] sm:$0xff] }
  0x2b   :  { %v67_v6 = vrot.slane %v58_v4, %v330_v2  ;;  %v71_v7 = vrot.slane %v58_v4, %v333_v3  ;;  %v75_v11 = vrot.slane %v58_v4, %v336_v5  ;;  %v79_v14 = vrot.slane %v58_v4, %v341_v8  ;;  %v48_v60 = vld [vmem:[#allocation2 + $0x68] sm:$0xff]  ;;  %v49_v0 = vld [vmem:[#allocation2 + $0x70] sm:$0xff] }
  0x2c   :  { %v83_v19 = vrot.slane %v58_v4, %v345_v12  ;;  %v87_v23 = vrot.slane %v58_v4, %v349_v15  ;;  %v91_v28 = vrot.slane %v58_v4, %v353_v20  ;;  %v95_v33 = vrot.slane %v58_v4, %v94_v24  ;;  %v60_v1 = vld [vmem:[#allocation4 + $0x10] sm:$0x7f] }
  0x2d   :  { %v179_v16 = vmul.f32 %v67_v6, %v35_v9  ;;  %v180_v17 = vmul.f32 %v71_v7, %v36_v10  ;;  %v181_v21 = vmul.f32 %v75_v11, %v37_v13  ;;  %v182_v25 = vmul.f32 %v79_v14, %v38_v18  ;;  %v50_v9 = vld [vmem:[#allocation2 + $0x78] sm:$0xff]  ;;  %v51_v14 = vld [vmem:[#allocation2 + $0x80] sm:$0xff] }
  0x2e   :  { %v183_v29 = vmul.f32 %v83_v19, %v39_v22  ;;  %v184_v34 = vmul.f32 %v87_v23, %v40_v27  ;;  %v99_v37 = vrot.slane %v59_v32, %v330_v2  ;;  %v185_v38 = vmul.f32 %v91_v28, %v41_v31  ;;  %v52_v19 = vld [vmem:[#allocation2 + $0x88] sm:$0xff]  ;;  %v54_v28 = vld [vmem:[#allocation2 + $0x98] sm:$0xff]  ;;  %v55_v31 = vld [vmem:[#allocation2 + $0xa0] sm:$0xff] }
  0x2f   :  { %v202_v26 = vadd.f32 %v180_v17, %v179_v16  ;;  %v103_v41 = vrot.slane %v59_v32, %v333_v3  ;;  %v186_v42 = vmul.f32 %v95_v33, %v42_v36  ;;  %v107_v45 = vrot.slane %v59_v32, %v336_v5 }
  0x30   :  { %v187_v46 = vmul.f32 %v99_v37, %v43_v40  ;;  %v111_v49 = vrot.slane %v59_v32, %v341_v8  ;;  %v115_v53 = vrot.slane %v59_v32, %v345_v12  ;;  %v119_v57 = vrot.slane %v59_v32, %v349_v15 }
  0x31   :  { %v203_v30 = vadd.f32 %v202_v26, %v181_v21  ;;  %v188_v50 = vmul.f32 %v103_v41, %v44_v44  ;;  %v189_v54 = vmul.f32 %v107_v45, %v45_v48  ;;  %v123_v61 = vrot.slane %v59_v32, %v353_v20 }
  0x32   :  { %v190_v58 = vmul.f32 %v111_v49, %v46_v52  ;;  %v191_v62 = vmul.f32 %v115_v53, %v47_v56  ;;  %v127_v4 = vrot.slane %v59_v32, %v94_v24  ;;  %v192_v6 = vmul.f32 %v119_v57, %v48_v60  ;;  %v57_v32 = vld [vmem:[#allocation2 + $0xb0] sm:$0xff] }
  0x33   :  { %v204_v35 = vadd.f32 %v203_v30, %v182_v25  ;;  %v131_v10 = vrot.slane %v60_v1, %v330_v2  ;;  %v193_v11 = vmul.f32 %v123_v61, %v49_v0  ;;  %v135_v16 = vrot.slane %v60_v1, %v333_v3  ;;  %v53_v25 = vld [vmem:[#allocation2 + $0x90] sm:$0xff] }
  0x34   :  { %v194_v17 = vmul.f32 %v127_v4, %v50_v9  ;;  %v139_v21 = vrot.slane %v60_v1, %v336_v5  ;;  %v143_v24 = vrot.slane %v60_v1, %v341_v8  ;;  %v147_v2 = vrot.slane %v60_v1, %v345_v12 }
  0x35   :  { %v205_v39 = vadd.f32 %v204_v35, %v183_v29  ;;  %v195_v22 = vmul.f32 %v131_v10, %v51_v14  ;;  %v196_v26 = vmul.f32 %v135_v16, %v52_v19  ;;  %v155_v3 = vrot.slane %v60_v1, %v353_v20  ;;  %v56_v35 = vld [vmem:[#allocation2 + $0xa8] sm:$0xff] }
  0x36   :  { %v197_v29 = vmul.f32 %v139_v21, %v53_v25  ;;  %v151_v33 = vrot.slane %v60_v1, %v349_v15  ;;  %v199_v36 = vmul.f32 %v147_v2, %v55_v31 }
  0x37   :  { %v206_v43 = vadd.f32 %v205_v39, %v184_v34  ;;  %v198_v34 = vmul.f32 %v143_v24, %v54_v28 }
  0x38   :  { %v200_v8 = vmul.f32 %v151_v33, %v56_v35 }
  0x39   :  { %v207_v47 = vadd.f32 %v206_v43, %v185_v38  ;;  %v201_v38 = vmul.f32 %v155_v3, %v57_v32 }
  0x3b   :  { %v208_v51 = vadd.f32 %v207_v47, %v186_v42  ;;  %v224_v41 = vsel %vm223_vm0, %v201_v38, 0.0 }
  0x3d   :  { %v209_v55 = vadd.f32 %v208_v51, %v187_v46 }
  0x3f   :  { %v210_v59 = vadd.f32 %v209_v55, %v188_v50 }
  0x41   :  { %v211_v63 = vadd.f32 %v210_v59, %v189_v54 }
  0x43   :  { %v212_v7 = vadd.f32 %v211_v63, %v190_v58 }
  0x45   :  { %v213_v13 = vadd.f32 %v212_v7, %v191_v62 }
  0x47   :  { %v214_v18 = vadd.f32 %v213_v13, %v192_v6 }
  0x49   :  { %v215_v23 = vadd.f32 %v214_v18, %v193_v11 }
  0x4b   :  { %v216_v27 = vadd.f32 %v215_v23, %v194_v17 }
  0x4d   :  { %v217_v30 = vadd.f32 %v216_v27, %v195_v22 }
  0x4f   :  { %v218_v5 = vadd.f32 %v217_v30, %v196_v26 }
  0x51   :  { %v219_v37 = vadd.f32 %v218_v5, %v197_v29 }
  0x53   :  { %v220_v39 = vadd.f32 %v219_v37, %v198_v34 }
  0x55   :  { %v221_v40 = vadd.f32 %v220_v39, %v199_v36 }
  0x57   :  { %v222_v12 = vadd.f32 %v221_v40, %v200_v8 }
  0x59   :  { %v225_v42 = vadd.f32 %v224_v41, %v222_v12 }
  0x5b   :  { %226 = vadd.xlane.f32.xlu0 %v225_v42 }
  0xe8   :  { %v227_v43 = vpop.xlane.xlu0 %226 }
  0xe9   :  { %229 = vst.msk [vmem:[%s377_s2] sm:$0xff] %vm228_vm1, %v227_v43 }
  0xea   :  { %234 = vsyncpa [#allocation3], 1 }
  0xeb   :  { %235 = vsyncpa [#allocation5], 1 }

</bundles_post_ra>
